<compile_context>
chip_gen: v5e
topology: v5e:2x2
jax: 0.10.0
libtpu: 0.0.40
codegen_flags: <defaults>
</compile_context>

<pallas_src>
import math

import jax
import jax.numpy as jnp
from jax.experimental import pallas as pl
from jax.experimental.pallas import tpu as pltpu


# ---------------------------------------------------------------------------
# Constant-folded coefficients (Python doubles, folded at trace time).
#   f(H, L, u, v) = (sqrt(L^2*u^2 + H^2*(u^2 - v^2)) - L*v) * (1/(u^2 - v^2))
# Term 1 radicand additionally uses the cancellation-free factorization
#   L^2*u^2 + H^2*(u^2 - v^2) = u^2 * (L - L2min) * (L + L2min),
#   L2min = H * sqrt(v^2 - u^2) / u.
# ---------------------------------------------------------------------------
_U = 1.5
_U2 = _U * _U                              # u^2 (same for both terms)

# term 1: H = 600, u = 1.5, v = 2.1
_V1 = 2.1
_D1 = _U2 - _V1 * _V1                      # u^2 - v^2  (negative)
_INV1 = 1.0 / _D1                          # reciprocal keeps the negative sign
_L2MIN = 600.0 * math.sqrt(_V1 * _V1 - _U2) / _U   # double-precision fold

# term 2: H = 300, u = 1.5, v = 0.875
_V2 = 0.875
_D2 = _U2 - _V2 * _V2
_C2 = 300.0 * 300.0 * _D2                  # H^2 * (u^2 - v^2)  (positive)
_INV2 = 1.0 / _D2


def t_forward_kernel(l2_smem, out_smem, acc_vmem):
    # L2 arrives as a 4-byte scalar in SMEM; broadcast once into a (1,1) vreg
    # tile and do the remaining ~10 VPU/EUP ops there.
    x = jnp.full((1, 1), l2_smem[0], dtype=jnp.float32)

    # term1 = f(600, L2, 1.5, 2.1), cancellation-free radicand.
    rad1 = _U2 * (x - _L2MIN) * (x + _L2MIN)
    t1 = (jnp.sqrt(rad1) - x * _V1) * _INV1

    # term2 = f(300, (1000 - L2)/2, 1.5, 0.875)
    Lb = (1000.0 - x) * 0.5
    t2 = (jnp.sqrt(Lb * Lb * _U2 + _C2) - Lb * _V2) * _INV2

    # Stage the vector result in VMEM scratch, then emit a single scalar
    # store to the SMEM output (no padded VMEM-tile writeback).
    acc_vmem[...] = t1 + 2.0 * t2
    out_smem[0] = acc_vmem[0, 0]


def t_forward(l2):
    """Forward of `T`. `l2` has shape (1,) like the torch nn.Parameter.

    NOTE: the output is a pure function of the parameter — cache the result at
    the call site and only recompute after a parameter update; do not call
    per step/batch (the fixed custom-call overhead dominates the ~20 flops).
    """
    l2_f32 = l2.reshape(1).astype(jnp.float32)
    out = pl.pallas_call(
        t_forward_kernel,
        out_shape=jax.ShapeDtypeStruct((1,), jnp.float32),
        in_specs=[pl.BlockSpec(memory_space=pltpu.MemorySpace.SMEM)],
        out_specs=pl.BlockSpec(memory_space=pltpu.MemorySpace.SMEM),
        scratch_shapes=[pltpu.VMEM((1, 1), jnp.float32)],
        cost_estimate=pl.CostEstimate(flops=20, transcendentals=2,
                                      bytes_accessed=8),
    )(l2_f32)
    return out


# ---------------------------------------------------------------------------
# Pure-JAX reference mirroring the PyTorch forward exactly (unfolded form).
# ---------------------------------------------------------------------------
def _f_ref(H, L, u, v):
    return (jnp.sqrt((H * H + L * L) * u * u - H * H * v * v) - L * v) / (u * u - v * v)


if __name__ == "__main__":
    # Deterministic parameter init matching T.__init__:
    #   L2min = 600 * sqrt(2.1^2 - 1.5^2) / 1.5
    #   L2    = rand([1]) + L2min + 2
    key = jax.random.PRNGKey(0)
    L2 = jax.random.uniform(key, (1,), dtype=jnp.float32) + jnp.float32(_L2MIN) + 2.0

    ret = t_forward(L2)
    jax.block_until_ready(ret)

    ref = _f_ref(600.0, L2, 1.5, 2.1) + 2.0 * _f_ref(300.0, (1000.0 - L2) / 2.0, 1.5, 0.875)
    assert ret.shape == (1,), ret.shape
    assert jnp.allclose(ret, ref, rtol=1e-4, atol=1e-4), (ret, ref)

    print("KERNEL_OK")
</pallas_src>

<mosaic_0001>
module attributes {stable_mosaic.version = 11 : i64} {
  func.func @t_forward_kernel(%arg0: memref<1xf32, #tpu.memory_space<smem>>, %arg1: memref<1xf32, #tpu.memory_space<smem>>, %arg2: memref<1x1xf32, #tpu.memory_space<vmem>>) attributes {dimension_semantics = [], scalar_prefetch = 0 : i64, scratch_operands = 1 : i64, tpu.core_type = #tpu.core_type<tc>} {
    %c0 = arith.constant 0 : index
    %0 = memref.load %arg0[%c0] : memref<1xf32, #tpu.memory_space<smem>>
    %1 = vector.broadcast %0 : f32 to vector<1x1xf32>
    %cst = arith.constant 587.877563 : f32
    %2 = vector.broadcast %cst : f32 to vector<1x1xf32>
    %3 = arith.subf %1, %2 : vector<1x1xf32>
    %cst_0 = arith.constant 2.250000e+00 : f32
    %4 = vector.broadcast %cst_0 : f32 to vector<1x1xf32>
    %5 = arith.mulf %4, %3 : vector<1x1xf32>
    %cst_1 = arith.constant 587.877563 : f32
    %6 = vector.broadcast %cst_1 : f32 to vector<1x1xf32>
    %7 = arith.addf %1, %6 : vector<1x1xf32>
    %8 = arith.mulf %5, %7 : vector<1x1xf32>
    %9 = math.sqrt %8 : vector<1x1xf32>
    %cst_2 = arith.constant 2.100000e+00 : f32
    %10 = vector.broadcast %cst_2 : f32 to vector<1x1xf32>
    %11 = arith.mulf %1, %10 : vector<1x1xf32>
    %12 = arith.subf %9, %11 : vector<1x1xf32>
    %cst_3 = arith.constant -0.462962955 : f32
    %13 = vector.broadcast %cst_3 : f32 to vector<1x1xf32>
    %14 = arith.mulf %12, %13 : vector<1x1xf32>
    %cst_4 = arith.constant 1.000000e+03 : f32
    %15 = vector.broadcast %cst_4 : f32 to vector<1x1xf32>
    %16 = arith.subf %15, %1 : vector<1x1xf32>
    %cst_5 = arith.constant 5.000000e-01 : f32
    %17 = vector.broadcast %cst_5 : f32 to vector<1x1xf32>
    %18 = arith.mulf %16, %17 : vector<1x1xf32>
    %19 = arith.mulf %18, %18 : vector<1x1xf32>
    %cst_6 = arith.constant 2.250000e+00 : f32
    %20 = vector.broadcast %cst_6 : f32 to vector<1x1xf32>
    %21 = arith.mulf %19, %20 : vector<1x1xf32>
    %cst_7 = arith.constant 133593.75 : f32
    %22 = vector.broadcast %cst_7 : f32 to vector<1x1xf32>
    %23 = arith.addf %21, %22 : vector<1x1xf32>
    %24 = math.sqrt %23 : vector<1x1xf32>
    %cst_8 = arith.constant 8.750000e-01 : f32
    %25 = vector.broadcast %cst_8 : f32 to vector<1x1xf32>
    %26 = arith.mulf %18, %25 : vector<1x1xf32>
    %27 = arith.subf %24, %26 : vector<1x1xf32>
    %cst_9 = arith.constant 0.673684239 : f32
    %28 = vector.broadcast %cst_9 : f32 to vector<1x1xf32>
    %29 = arith.mulf %27, %28 : vector<1x1xf32>
    %cst_10 = arith.constant 2.000000e+00 : f32
    %30 = vector.broadcast %cst_10 : f32 to vector<1x1xf32>
    %31 = arith.mulf %30, %29 : vector<1x1xf32>
    %32 = arith.addf %14, %31 : vector<1x1xf32>
    %c0_11 = arith.constant 0 : index
    %c0_12 = arith.constant 0 : index
    %33 = vector.load %arg2[%c0_11, %c0_12] : memref<1x1xf32, #tpu.memory_space<vmem>>, vector<1x1xf32>
    tpu.vector_store %arg2[%c0_11, %c0_12], %32 {strides = array<i32>} : memref<1x1xf32, #tpu.memory_space<vmem>>, vector<1x1xf32>,
    %c0_13 = arith.constant 0 : index
    %c0_14 = arith.constant 0 : index
    %34 = vector.load %arg2[%c0_13, %c0_14] : memref<1x1xf32, #tpu.memory_space<vmem>>, vector<1x1xf32>
    %35 = vector.extract %34[0, 0] : f32 from vector<1x1xf32>
    %c0_15 = arith.constant 0 : index
    %36 = memref.load %arg1[%c0_15] : memref<1xf32, #tpu.memory_space<smem>>
    memref.store %35, %arg1[%c0_15] : memref<1xf32, #tpu.memory_space<smem>>
    return
  }
}

</mosaic_0001>

<bundles_post_ra>
// kernel: tpu_custom_call.1
= control target key start
LH: loop header
LB: loop body
LE: loop exit
PB: predicated region body
PF: predicated region fallthrough
CT: control target
= control target key end

     0   :  { %s113_s0 = inlined_call_operand.<no memory space> [shape: f32[1], index: 0, kind: input, shape index: {}]   ;;  %s114_s1 = inlined_call_operand.hbm [shape: f32[1], index: 1, kind: output, shape index: {}]  }
   0x1   :  { %v11_v0 = vstv %s113_s0 }
   0x2   :  { %7 = vsyncpa [#allocation5], 0  ;;  %v74_v1 = vadd.f32 -587.87756, %v11_v0  ;;  %v14_v2 = vadd.f32 587.87756, %v11_v0 }
   0x3   :  { %v31_v3 = vsub.f32 1000.0, %v11_v0  ;;  %v28_v24 = vmul.f32 2.1, %v11_v0  ;;  %vm53_vm4 = vcmask 0   ;;  %s64_s9 = sshll.u32 %s114_s1, 4  ;;  %s96_s11 = smov [#allocation4]   ;;  %s65_s9 = int_to_ptr.hbm [resolvable:$true] %s64_s9 }
   0x4   :  { %v13_v4 = vmul.f32 2.25, %v74_v1 }
   0x5   :  { %v32_v5 = vmul.f32 0.5, %v31_v3 }
   0x6   :  { %v15_v6 = vmul.f32 %v14_v2, %v13_v4 }
   0x7   :  { %v33_v7 = vmul.f32 %v32_v5, %v32_v5  ;;  %v48_v29 = vmul.f32 0.875, %v32_v5 }
   0x8   :  { %78 = vrsqrt.f32 %v15_v6  ;;  %vm23_vm0 = vcmp.eq.f32.partialorder %v15_v6, inf  ;;  %v26_v21 = vand.u32 2147483648, %v15_v6  ;;  %vm25_vm1 = vcmp.eq.f32.partialorder %v15_v6, 0.0 }
   0x9   :  { %v34_v8 = vmul.f32 2.25, %v33_v7 }
   0xb   :  { %v35_v9 = vadd.f32 133593.75, %v34_v8 }
   0xd   :  { %80 = vrsqrt.f32 %v35_v9  ;;  %vm43_vm2 = vcmp.eq.f32.partialorder %v35_v9, inf  ;;  %v46_v27 = vand.u32 2147483648, %v35_v9  ;;  %vm45_vm3 = vcmp.eq.f32.partialorder %v35_v9, 0.0 }
   0xe   :  { %v79_v10 = vpop.eup %78 }
   0xf   :  { %v17_v11 = vmul.f32 %v79_v10, %v15_v6 }
  0x11   :  { %v18_v12 = vmul.f32 %v79_v10, %v17_v11 }
  0x13   :  { %v81_v13 = vpop.eup %80  ;;  %v19_v14 = vmul.f32 0.5, %v18_v12 }
  0x14   :  { %v37_v15 = vmul.f32 %v81_v13, %v35_v9 }
  0x15   :  { %v20_v16 = vsub.f32 1.5, %v19_v14 }
  0x16   :  { %v38_v17 = vmul.f32 %v81_v13, %v37_v15 }
  0x17   :  { %v21_v18 = vmul.f32 %v79_v10, %v20_v16 }
  0x18   :  { %v39_v19 = vmul.f32 0.5, %v38_v17 }
  0x19   :  { %v22_v20 = vmul.f32 %v21_v18, %v15_v6 }
  0x1a   :  { %v40_v22 = vsub.f32 1.5, %v39_v19 }
  0x1b   :  { %v24_v23 = vsel %vm23_vm0, %v15_v6, %v22_v20 }
  0x1c   :  { %v41_v25 = vmul.f32 %v81_v13, %v40_v22  ;;  %v27_v26 = vsel %vm25_vm1, %v26_v21, %v24_v23 }
  0x1d   :  { %v29_v30 = vsub.f32 %v27_v26, %v28_v24 }
  0x1e   :  { %v42_v28 = vmul.f32 %v41_v25, %v35_v9 }
  0x1f   :  { %v30_v34 = vmul.f32 -0.46296296, %v29_v30 }
  0x20   :  { %v44_v31 = vsel %vm43_vm2, %v35_v9, %v42_v28 }
  0x21   :  { %v47_v32 = vsel %vm45_vm3, %v46_v27, %v44_v31 }
  0x22   :  { %v49_v33 = vsub.f32 %v47_v32, %v48_v29 }
  0x24   :  { %v50_v35 = vmul.f32 0.67368424, %v49_v33 }
  0x26   :  { %v51_v36 = vmul.f32 2.0, %v50_v35 }
  0x28   :  { %v52_v37 = vadd.f32 %v51_v36, %v30_v34 }
  0x2a   :  { %54 = vst.msk [vmem:[#allocation2] sm:$0x1] %vm53_vm4, %v52_v37 }
  0x31   :  { %v55_v38 = vld [vmem:[#allocation2] sm:$0x1] }
  0x32   :  { %75 = vpush %v55_v38 }
  0x63   :  { %s76_s10 = spop %75 }
  0x64   :  { %58 = sst [smem:[#allocation4]] %s76_s10 }
  0x65   :  { %67 = dma.smem_to_hbm %s96_s11, 16, %s65_s9, [#allocation5]  }
  0x66   :  { %94 = dma.done.wait [#allocation5], 16  }
  0x67   :  { %95 = vsyncadd [#allocation5], 4294967280 }
  0x68   :  { %72 = sfence }
  0x69   :  { %73 = vsyncpa [#allocation5], 1 }

</bundles_post_ra>
